<compile_context>
chip_gen: v7x
topology: tpu7x:2x2x1
jax: 0.10.0
libtpu: 0.0.40
codegen_flags: <defaults>
</compile_context>

<pallas_src>
import functools

import jax
import jax.numpy as jnp
from jax import lax
from jax.experimental import pallas as pl
from jax.experimental.pallas import tpu as pltpu

LANES = 128
TM_MAX = 2048  # max sublane rows per grid step (1 MiB f32 per input block)


def _round_up(x, m):
    return (x + m - 1) // m * m


def _dice_partial_kernel(tm, rem_elems, x_ref, t_ref,
                         inter_ref, sin_ref, tgt_ref):
    """Per-block partial sums: intersection, sum(sigmoid(x)), sum(targets)."""

    def emit(x, t):
        # sigmoid via tanh: transcendental goes to the EUP slot.
        s = 0.5 * jnp.tanh(0.5 * x) + 0.5
        st = s * t

        def rowsum8(v):
            # (tm,128) -> (tm//8, 8, 128) is layout-preserving (sublane groups);
            # summing axis=0 is plain vreg adds on the VPU (no XLU in hot loop).
            return jnp.sum(v.reshape(tm // 8, 8, LANES), axis=0)

        inter_ref[0] = rowsum8(st)
        sin_ref[0] = rowsum8(s)
        tgt_ref[0] = rowsum8(t)

    full = tm * LANES
    if rem_elems == full:
        # Evenly divided: no masking anywhere.
        emit(x_ref[...].astype(jnp.float32), t_ref[...].astype(jnp.float32))
    else:
        is_last = pl.program_id(0) == pl.num_programs(0) - 1

        @pl.when(jnp.logical_not(is_last))
        def _():
            emit(x_ref[...].astype(jnp.float32),
                 t_ref[...].astype(jnp.float32))

        @pl.when(is_last)
        def _():
            x = x_ref[...].astype(jnp.float32)
            t = t_ref[...].astype(jnp.float32)
            r = lax.broadcasted_iota(jnp.int32, (tm, LANES), 0)
            c = lax.broadcasted_iota(jnp.int32, (tm, LANES), 1)
            valid = (r * LANES + c) < rem_elems
            # Invalid lanes: logits -> -1e30 (sigmoid -> 0), targets -> 0,
            # so padded / out-of-bounds elements contribute nothing.
            emit(jnp.where(valid, x, -1e30), jnp.where(valid, t, 0.0))


def dice_loss(inputs, targets, smooth=1.0):
    """Pallas implementation of DiceLoss.forward. Returns a scalar f32."""
    n = inputs.size
    assert targets.size == n

    x = inputs.reshape(-1)
    t = targets.reshape(-1)

    # Pad to a multiple of 128 only when necessary (free view otherwise).
    if n % LANES != 0:
        pad = LANES - n % LANES
        x = jnp.pad(x, (0, pad))
        t = jnp.pad(t, (0, pad))
    rows = x.size // LANES
    x2 = x.reshape(rows, LANES)
    t2 = t.reshape(rows, LANES)

    tm = min(TM_MAX, _round_up(rows, 8))
    num_blocks = pl.cdiv(rows, tm)
    # Number of valid (un-padded) flat elements covered by the last block.
    rem_elems = n - (num_blocks - 1) * tm * LANES

    kernel = functools.partial(_dice_partial_kernel, tm, rem_elems)
    part_shape = jax.ShapeDtypeStruct((num_blocks, 8, LANES), jnp.float32)

    inter_p, sin_p, tgt_p = pl.pallas_call(
        kernel,
        out_shape=(part_shape, part_shape, part_shape),
        grid_spec=pltpu.PrefetchScalarGridSpec(
            num_scalar_prefetch=0,
            grid=(num_blocks,),
            in_specs=[
                pl.BlockSpec((tm, LANES), lambda i: (i, 0)),
                pl.BlockSpec((tm, LANES), lambda i: (i, 0)),
            ],
            out_specs=[
                pl.BlockSpec((1, 8, LANES), lambda i: (i, 0, 0)),
                pl.BlockSpec((1, 8, LANES), lambda i: (i, 0, 0)),
                pl.BlockSpec((1, 8, LANES), lambda i: (i, 0, 0)),
            ],
        ),
        compiler_params=pltpu.CompilerParams(
            dimension_semantics=("parallel",)),
    )(x2, t2)

    # Tiny final reduction + dice formula in plain JAX (f32).
    intersection = jnp.sum(inter_p)
    s_in = jnp.sum(sin_p)
    s_tg = jnp.sum(tgt_p)
    dice = (2.0 * intersection + smooth) / (s_in + s_tg + smooth)
    return 1.0 - dice


def _dice_loss_ref(inputs, targets, smooth=1.0):
    s = jax.nn.sigmoid(inputs.reshape(-1).astype(jnp.float32))
    t = targets.reshape(-1).astype(jnp.float32)
    inter = jnp.sum(s * t)
    dice = (2.0 * inter + smooth) / (jnp.sum(s) + jnp.sum(t) + smooth)
    return 1.0 - dice


if __name__ == "__main__":
    key = jax.random.PRNGKey(0)
    k1, k2 = jax.random.split(key)

    # Segmentation-style DiceLoss shapes: N=2, C=4, H=W=16.
    inputs = jax.random.normal(k1, (2, 4, 16, 16), dtype=jnp.float32)   # logits
    targets = (jax.random.uniform(k2, (2, 4, 16, 16)) > 0.5).astype(jnp.float32)

    loss = dice_loss(inputs, targets, smooth=1.0)
    loss = jax.block_until_ready(loss)

    ref = _dice_loss_ref(inputs, targets, smooth=1.0)
    assert jnp.allclose(loss, ref, rtol=1e-5, atol=1e-5), (loss, ref)

    # Also exercise the ragged-tail (masked last block) path.
    inputs2 = jax.random.normal(k1, (3, 5, 7, 11), dtype=jnp.float32)
    targets2 = (jax.random.uniform(k2, (3, 5, 7, 11)) > 0.5).astype(jnp.float32)
    loss2 = jax.block_until_ready(dice_loss(inputs2, targets2, smooth=1.0))
    ref2 = _dice_loss_ref(inputs2, targets2, smooth=1.0)
    assert jnp.allclose(loss2, ref2, rtol=1e-5, atol=1e-5), (loss2, ref2)

    print("KERNEL_OK")
</pallas_src>

<mosaic_0001>
module attributes {stable_mosaic.version = 11 : i64} {
  func.func @_dice_partial_kernel(%arg0: i32, %arg1: memref<16x128xf32, #tpu.memory_space<vmem>>, %arg2: memref<16x128xf32, #tpu.memory_space<vmem>>, %arg3: memref<1x8x128xf32, #tpu.memory_space<vmem>>, %arg4: memref<1x8x128xf32, #tpu.memory_space<vmem>>, %arg5: memref<1x8x128xf32, #tpu.memory_space<vmem>>) attributes {dimension_semantics = [#tpu.dimension_semantics<parallel>], iteration_bounds = array<i64: 1>, scalar_prefetch = 0 : i64, scratch_operands = 0 : i64, tpu.core_type = #tpu.core_type<tc>, window_params = [{transform_indices = @transform_0, window_bounds = array<i64: 16, 128>}, {transform_indices = @transform_1, window_bounds = array<i64: 16, 128>}, {transform_indices = @transform_2, window_bounds = array<i64: 1, 8, 128>}, {transform_indices = @transform_3, window_bounds = array<i64: 1, 8, 128>}, {transform_indices = @transform_4, window_bounds = array<i64: 1, 8, 128>}]} {
    %c0 = arith.constant 0 : index
    %c0_0 = arith.constant 0 : index
    %0 = vector.load %arg1[%c0, %c0_0] : memref<16x128xf32, #tpu.memory_space<vmem>>, vector<16x128xf32>
    %c0_1 = arith.constant 0 : index
    %c0_2 = arith.constant 0 : index
    %1 = vector.load %arg2[%c0_1, %c0_2] : memref<16x128xf32, #tpu.memory_space<vmem>>, vector<16x128xf32>
    %cst = arith.constant 5.000000e-01 : f32
    %2 = vector.broadcast %cst : f32 to vector<16x128xf32>
    %3 = arith.mulf %2, %0 : vector<16x128xf32>
    %4 = math.tanh %3 : vector<16x128xf32>
    %cst_3 = arith.constant 5.000000e-01 : f32
    %5 = vector.broadcast %cst_3 : f32 to vector<16x128xf32>
    %6 = arith.mulf %5, %4 : vector<16x128xf32>
    %cst_4 = arith.constant 5.000000e-01 : f32
    %7 = vector.broadcast %cst_4 : f32 to vector<16x128xf32>
    %8 = arith.addf %6, %7 : vector<16x128xf32>
    %9 = arith.mulf %8, %1 : vector<16x128xf32>
    %10 = vector.shape_cast %9 : vector<16x128xf32> to vector<2x8x128xf32>
    %cst_5 = arith.constant dense<0.000000e+00> : vector<8x128xf32>
    %11 = vector.multi_reduction <add>, %10, %cst_5 [0] : vector<2x8x128xf32> to vector<8x128xf32>
    %c0_6 = arith.constant 0 : index
    %c0_7 = arith.constant 0 : index
    %c0_8 = arith.constant 0 : index
    %12 = vector.load %arg3[%c0_6, %c0_7, %c0_8] : memref<1x8x128xf32, #tpu.memory_space<vmem>>, vector<1x8x128xf32>
    %13 = vector.shape_cast %12 : vector<1x8x128xf32> to vector<8x128xf32>
    %14 = vector.shape_cast %11 : vector<8x128xf32> to vector<1x8x128xf32>
    tpu.vector_store %arg3[%c0_6, %c0_7, %c0_8], %14 {strides = array<i32>} : memref<1x8x128xf32, #tpu.memory_space<vmem>>, vector<1x8x128xf32>,
    %15 = vector.shape_cast %8 : vector<16x128xf32> to vector<2x8x128xf32>
    %cst_9 = arith.constant dense<0.000000e+00> : vector<8x128xf32>
    %16 = vector.multi_reduction <add>, %15, %cst_9 [0] : vector<2x8x128xf32> to vector<8x128xf32>
    %c0_10 = arith.constant 0 : index
    %c0_11 = arith.constant 0 : index
    %c0_12 = arith.constant 0 : index
    %17 = vector.load %arg4[%c0_10, %c0_11, %c0_12] : memref<1x8x128xf32, #tpu.memory_space<vmem>>, vector<1x8x128xf32>
    %18 = vector.shape_cast %17 : vector<1x8x128xf32> to vector<8x128xf32>
    %19 = vector.shape_cast %16 : vector<8x128xf32> to vector<1x8x128xf32>
    tpu.vector_store %arg4[%c0_10, %c0_11, %c0_12], %19 {strides = array<i32>} : memref<1x8x128xf32, #tpu.memory_space<vmem>>, vector<1x8x128xf32>,
    %20 = vector.shape_cast %1 : vector<16x128xf32> to vector<2x8x128xf32>
    %cst_13 = arith.constant dense<0.000000e+00> : vector<8x128xf32>
    %21 = vector.multi_reduction <add>, %20, %cst_13 [0] : vector<2x8x128xf32> to vector<8x128xf32>
    %c0_14 = arith.constant 0 : index
    %c0_15 = arith.constant 0 : index
    %c0_16 = arith.constant 0 : index
    %22 = vector.load %arg5[%c0_14, %c0_15, %c0_16] : memref<1x8x128xf32, #tpu.memory_space<vmem>>, vector<1x8x128xf32>
    %23 = vector.shape_cast %22 : vector<1x8x128xf32> to vector<8x128xf32>
    %24 = vector.shape_cast %21 : vector<8x128xf32> to vector<1x8x128xf32>
    tpu.vector_store %arg5[%c0_14, %c0_15, %c0_16], %24 {strides = array<i32>} : memref<1x8x128xf32, #tpu.memory_space<vmem>>, vector<1x8x128xf32>,
    return
  }
  func.func @transform_0(%arg0: i32) -> (i32, i32) {
    %c0_i32 = arith.constant 0 : i32
    %c0_i32_0 = arith.constant 0 : i32
    return %arg0, %c0_i32 : i32, i32
  }
  func.func @transform_1(%arg0: i32) -> (i32, i32) {
    %c0_i32 = arith.constant 0 : i32
    %c0_i32_0 = arith.constant 0 : i32
    return %arg0, %c0_i32 : i32, i32
  }
  func.func @transform_2(%arg0: i32) -> (i32, i32, i32) {
    %c0_i32 = arith.constant 0 : i32
    %c0_i32_0 = arith.constant 0 : i32
    %c0_i32_1 = arith.constant 0 : i32
    return %arg0, %c0_i32, %c0_i32_0 : i32, i32, i32
  }
  func.func @transform_3(%arg0: i32) -> (i32, i32, i32) {
    %c0_i32 = arith.constant 0 : i32
    %c0_i32_0 = arith.constant 0 : i32
    %c0_i32_1 = arith.constant 0 : i32
    return %arg0, %c0_i32, %c0_i32_0 : i32, i32, i32
  }
  func.func @transform_4(%arg0: i32) -> (i32, i32, i32) {
    %c0_i32 = arith.constant 0 : i32
    %c0_i32_0 = arith.constant 0 : i32
    %c0_i32_1 = arith.constant 0 : i32
    return %arg0, %c0_i32, %c0_i32_0 : i32, i32, i32
  }
}

</mosaic_0001>

<bundles_post_ra>
// kernel: tpu_custom_call.1
= control target key start
LH: loop header
LB: loop body
LE: loop exit
PB: predicated region body
PF: predicated region fallthrough
CT: control target
= control target key end

     0   :  { %10 = vsyncpa [#allocation3], 0  ;;  %s342_s0 = inlined_call_operand.hbm [shape: f32[16,128], index: 0, kind: input, shape index: {}]   ;;  %s343_s1 = inlined_call_operand.hbm [shape: f32[16,128], index: 1, kind: input, shape index: {}]   ;;  %s344_s2 = inlined_call_operand.hbm [shape: f32[1,8,128], index: 2, kind: output, shape index: {0}]   ;;  %s345_s3 = inlined_call_operand.hbm [shape: f32[1,8,128], index: 3, kind: output, shape index: {1}]   ;;  %s346_s4 = inlined_call_operand.hbm [shape: f32[1,8,128], index: 4, kind: output, shape index: {2}]  }
   0x1   :  { %11 = vsyncpa [#allocation6], 0 }
   0x2   :  { %12 = vsyncpa [#allocation4], 0 }
   0x3   :  { %13 = vsyncpa [#allocation9], 0  ;;  %s236_s15 = smov [#allocation2]   ;;  %s118_s19 = scalar_lea.hbm %s342_s0, 256 }
   0x4   :  { %s19_s16 = sshll.u32 %s236_s15, 4  ;;  %p119_p0 = scmp.ne.s32.totalorder %s342_s0, %s118_s19  ;;  %s20_s16 = int_to_ptr.vmem [resolvable:$true] %s19_s16 }
   0x5   :  { %p122_p1 = scmp.lt.u32.totalorder %s118_s19, %s342_s0 }
   0x7   :  { %p124_p2 = pnand %p122_p1, %p119_p0 }
   0x9   :  { %127 = shalt.err (!%p124_p2)
}
   0xa   :  { %s128_s24 = scalar_lea.vmem %s20_s16, 256  ;;  %p133_p4 = scmp.lt.s32.totalorder %s20_s16, %s20_s16 }
   0xb   :  { %p129_p3 = scmp.ne.s32.totalorder %s20_s16, %s128_s24  ;;  %p134_p5 = scmp.lt.s32.totalorder %s128_s24, %s128_s24 }
   0xd   :  { %p135_p6 = por %p134_p5, %p133_p4 }
   0xf   :  { %p136_p7 = pnand %p135_p6, %p129_p3 }
  0x11   :  { %139 = shalt.err (!%p136_p7)
}
  0x12   :  { %s237_s25 = smov 128   ;;  %s238_s26 = smov 8  }
  0x13   :  { %25 = dma.hbm_to_vmem [thread:$0]  %s342_s0, 256, %s20_s16, [#allocation3], %s237_s25, %s237_s25, %s238_s26  }
  0x14   :  { %s239_s29 = smov [#allocation5]   ;;  %s140_s7 = scalar_lea.hbm %s343_s1, 256 }
  0x15   :  { %s31_s30 = sshll.u32 %s239_s29, 4  ;;  %p141_p8 = scmp.ne.s32.totalorder %s343_s1, %s140_s7  ;;  %s32_s30 = int_to_ptr.vmem [resolvable:$true] %s31_s30 }
  0x16   :  { %p144_p9 = scmp.lt.u32.totalorder %s140_s7, %s343_s1 }
  0x18   :  { %p146_p10 = pnand %p144_p9, %p141_p8 }
  0x1a   :  { %149 = shalt.err (!%p146_p10)
}
  0x1b   :  { %s150_s12 = scalar_lea.vmem %s32_s30, 256  ;;  %p155_p12 = scmp.lt.s32.totalorder %s32_s30, %s32_s30 }
  0x1c   :  { %p151_p11 = scmp.ne.s32.totalorder %s32_s30, %s150_s12  ;;  %p156_p13 = scmp.lt.s32.totalorder %s150_s12, %s150_s12 }
  0x1e   :  { %p157_p0 = por %p156_p13, %p155_p12 }
  0x20   :  { %p158_p1 = pnand %p157_p0, %p151_p11 }
  0x22   :  { %161 = shalt.err (!%p158_p1)
}
  0x23   :  { %37 = dma.hbm_to_vmem [thread:$0]  %s343_s1, 256, %s32_s30, [#allocation6], %s237_s25, %s237_s25, %s238_s26  }
  0x24   :  { %228 = dma.done.wait [#allocation3], 256  }
  0x25   :  { %229 = vsyncadd [#allocation3], 4294967040 }
  0x26   :  { %230 = dma.done.wait [#allocation6], 256  }
  0x27   :  { %231 = vsyncadd [#allocation6], 4294967040  ;;  %v44_v0 = vld [vmem:[#allocation2] sm:$0xff]  ;;  %v45_v1 = vld [vmem:[#allocation2 + $0x8] sm:$0xff]  ;;  %s240_s1 = smov [#allocation8]   ;;  %s241_s15 = smov [#allocation10]  }
  0x28   :  { %v48_v2 = vmul.f32 0.5, %v44_v0  ;;  %v49_v3 = vmul.f32 0.5, %v45_v1  ;;  %v46_v4 = vld [vmem:[#allocation5] sm:$0xff]  ;;  %v47_v5 = vld [vmem:[#allocation5 + $0x8] sm:$0xff]  ;;  %s80_s14 = sshll.u32 %s240_s1, 4  ;;  %s90_s16 = sshll.u32 %s241_s15, 4  ;;  %s81_s14 = int_to_ptr.vmem [resolvable:$true] %s80_s14  ;;  %s292_s16 = int_to_ptr.vmem [resolvable:$true] %s90_s16 }
  0x29   :  { %v62_v6 = vadd.f32 %v47_v5, %v46_v4  ;;  %s242_s17 = smov [#allocation7]   ;;  %s162_s19 = scalar_lea.vmem %s81_s14, 128 }
  0x2a   :  { %114 = vtanh.f32 %v48_v2  ;;  %s70_s18 = sshll.u32 %s242_s17, 4  ;;  %p163_p2 = scmp.ne.s32.totalorder %s81_s14, %s162_s19  ;;  %s294_s18 = int_to_ptr.vmem [resolvable:$true] %s70_s18 }
  0x2b   :  { %116 = vtanh.f32 %v49_v3  ;;  %63 = vst [vmem:[#allocation10] sm:$0xff] %v62_v6  ;;  %p167_p3 = scmp.lt.s32.totalorder %s81_s14, %s81_s14  ;;  %p168_p4 = scmp.lt.s32.totalorder %s162_s19, %s162_s19 }
  0x2d   :  { %p169_p5 = por %p168_p4, %p167_p3 }
  0x2f   :  { %p170_p6 = pnand %p169_p5, %p163_p2 }
  0x34   :  { %v115_v7 = vpop.eup %114 }
  0x35   :  { %v117_v8 = vpop.eup %116  ;;  %v52_v9 = vmul.f32 0.5, %v115_v7 }
  0x36   :  { %v53_v10 = vmul.f32 0.5, %v117_v8 }
  0x37   :  { %v54_v11 = vadd.f32 0.5, %v52_v9 }
  0x38   :  { %v55_v12 = vadd.f32 0.5, %v53_v10 }
  0x39   :  { %v56_v13 = vmul.f32 %v54_v11, %v46_v4 }
  0x3a   :  { %v60_v14 = vadd.f32 %v55_v12, %v54_v11  ;;  %v57_v15 = vmul.f32 %v55_v12, %v47_v5 }
  0x3c   :  { %61 = vst [vmem:[#allocation8] sm:$0xff] %v60_v14  ;;  %v58_v16 = vadd.f32 %v57_v15, %v56_v13 }
  0x3d   :  { %173 = shalt.err (!%p170_p6)
}
  0x3e   :  { %s174_s22 = scalar_lea.hbm %s345_s3, 128 }
  0x3f   :  { %p175_p7 = scmp.ne.s32.totalorder %s345_s3, %s174_s22  ;;  %p178_p8 = scmp.lt.u32.totalorder %s174_s22, %s345_s3 }
  0x41   :  { %p180_p9 = pnand %p178_p8, %p175_p7 }
  0x43   :  { %183 = shalt.err (!%p180_p9)
}
  0x44   :  { %83 = dma.vmem_to_hbm [thread:$0]  %s81_s14, 128, %s345_s3, [#allocation9]   ;;  %59 = vst [vmem:[#allocation7] sm:$0xff] %v58_v16 }
  0x45   :  { %s184_s29 = scalar_lea.vmem %s292_s16, 128  ;;  %p189_p11 = scmp.lt.s32.totalorder %s292_s16, %s292_s16 }
  0x46   :  { %p185_p10 = scmp.ne.s32.totalorder %s292_s16, %s184_s29  ;;  %p190_p12 = scmp.lt.s32.totalorder %s184_s29, %s184_s29 }
  0x48   :  { %p191_p13 = por %p190_p12, %p189_p11 }
  0x4a   :  { %p192_p0 = pnand %p191_p13, %p185_p10 }
  0x4c   :  { %195 = shalt.err (!%p192_p0)
}
  0x4d   :  { %s196_s6 = scalar_lea.hbm %s346_s4, 128 }
  0x4e   :  { %p197_p1 = scmp.ne.s32.totalorder %s346_s4, %s196_s6  ;;  %p200_p2 = scmp.lt.u32.totalorder %s196_s6, %s346_s4 }
  0x50   :  { %p202_p3 = pnand %p200_p2, %p197_p1 }
  0x52   :  { %205 = shalt.err (!%p202_p3)
}
  0x53   :  { %93 = dma.vmem_to_hbm [thread:$0]  %s292_s16, 128, %s346_s4, [#allocation9]  }
  0x54   :  { %s206_s12 = scalar_lea.vmem %s294_s18, 128  ;;  %p211_p5 = scmp.lt.s32.totalorder %s294_s18, %s294_s18 }
  0x55   :  { %p207_p4 = scmp.ne.s32.totalorder %s294_s18, %s206_s12  ;;  %p212_p6 = scmp.lt.s32.totalorder %s206_s12, %s206_s12 }
  0x57   :  { %p213_p7 = por %p212_p6, %p211_p5 }
  0x59   :  { %p214_p8 = pnand %p213_p7, %p207_p4 }
  0x5b   :  { %217 = shalt.err (!%p214_p8)
}
  0x5c   :  { %s218_s1 = scalar_lea.hbm %s344_s2, 128 }
  0x5d   :  { %p219_p9 = scmp.ne.s32.totalorder %s344_s2, %s218_s1  ;;  %p222_p10 = scmp.lt.u32.totalorder %s218_s1, %s344_s2 }
  0x5f   :  { %p224_p11 = pnand %p222_p10, %p219_p9 }
  0x61   :  { %227 = shalt.err (!%p224_p11)
}
  0x62   :  { %73 = dma.vmem_to_hbm [thread:$0]  %s294_s18, 128, %s344_s2, [#allocation4]  }
  0x63   :  { %232 = dma.done.wait [#allocation4], 128  }
  0x64   :  { %233 = vsyncadd [#allocation4], 4294967168 }
  0x65   :  { %234 = dma.done.wait [#allocation9], 256  }
  0x66   :  { %235 = vsyncadd [#allocation9], 4294967040 }
  0x67   :  { %103 = vsyncpa [#allocation3], 1 }
  0x68   :  { %104 = vsyncpa [#allocation6], 1 }
  0x69   :  { %105 = vsyncpa [#allocation4], 1 }
  0x6a   :  { %106 = vsyncpa [#allocation9], 1 }

</bundles_post_ra>
